<compile_context>
chip_gen: v7x
topology: tpu7x:2x2x1
jax: 0.10.0
libtpu: 0.0.40
codegen_flags: <defaults>
</compile_context>

<pallas_src>
import jax
import jax.numpy as jnp
from jax.experimental import pallas as pl
from jax.experimental.pallas import tpu as pltpu

LANE = 128     # lane width (last-dim VMEM layout unit)
SUBLANE = 8    # sublane alignment for the batch (second-to-last) dim


def _round_up(x, m):
    return (x + m - 1) // m * m


def mlp_kernel(x_ref, w1_ref, b1_ref, w2_ref, b2_ref, w3_ref, b3_ref, o_ref):
    """Fused (Linear->ReLU)x2 -> Linear on one batch tile, all operands in VMEM.

    Weights may be bf16 (MXU-native on v5e/v6e/v7x); bias/ReLU math and matmul
    accumulation stay in f32 (exact epilogue, v5e has no bf16 VPU).
    """
    cdt = w1_ref.dtype  # compute dtype fed to the MXU
    x = x_ref[...].astype(cdt)
    h1 = jnp.dot(x, w1_ref[...], preferred_element_type=jnp.float32) + b1_ref[...]
    h1 = jnp.maximum(h1, 0.0)
    h2 = jnp.dot(h1.astype(cdt), w2_ref[...],
                 preferred_element_type=jnp.float32) + b2_ref[...]
    h2 = jnp.maximum(h2, 0.0)
    out = jnp.dot(h2.astype(cdt), w3_ref[...],
                  preferred_element_type=jnp.float32) + b3_ref[...]
    o_ref[...] = out.astype(o_ref.dtype)


def prepare_params(params, *, compute_dtype=jnp.bfloat16):
    """One-time weight prep (pad hidden dim to 128 lanes, cast to MXU dtype).

    Call once and reuse the result across forward calls so the pad/cast HBM
    passes are not re-executed per call. compute_dtype=bf16 is recommended on
    all TPU generations (f32 accumulation is kept inside the kernel).
    """
    w1, b1, w2, b2, w3, b3 = params
    d_in, w = w1.shape
    d_out = w3.shape[1]
    w_p = _round_up(w, LANE)

    def pad2(a, rows, cols):
        return jnp.pad(a, ((0, rows - a.shape[0]), (0, cols - a.shape[1])))

    # Only the hidden dim is lane-padded (zero columns/rows contribute zeros).
    # d_in and d_out stay unpadded: x is read and y is written at native width.
    w1p = pad2(w1, d_in, w_p).astype(compute_dtype)
    w2p = pad2(w2, w_p, w_p).astype(compute_dtype)
    w3p = pad2(w3, w_p, d_out).astype(compute_dtype)
    b1p = pad2(b1, 1, w_p)   # biases stay f32 (exact epilogue)
    b2p = pad2(b2, 1, w_p)
    b3p = b3                 # (1, d_out) unpadded
    return (w1p, b1p, w2p, b2p, w3p, b3p)


def neural_network_forward(x, prepared_params, *, tile_b=1024):
    """Pallas forward. x: (B, input_shape). prepared_params from prepare_params.

    The kernel is HBM/overhead-bound at these arithmetic intensities, so the
    batch tile is large (1024 rows by default) and the feature/output dims are
    streamed at native (unpadded) width.
    """
    w1p, b1p, w2p, b2p, w3p, b3p = prepared_params
    B, d_in = x.shape
    assert d_in == w1p.shape[0], "input feature dim mismatch"
    w_p = w1p.shape[1]
    d_out = w3p.shape[1]

    # ---- batch tiling ------------------------------------------------------
    B_8 = _round_up(B, SUBLANE)
    tb = min(tile_b, B_8)
    if B_8 >= 256:
        # Guarantee >= 2 grid steps for moderate/large batches so both v7x
        # TensorCores get work (negligible extra grid-step cost on v5e/v6e).
        tb = min(tb, _round_up(-(-B_8 // 2), SUBLANE))
    B_p = _round_up(B, tb)
    nb = B_p // tb
    xp = x if B_p == B else jnp.pad(x, ((0, B_p - B), (0, 0)))  # rows only

    # ---- VMEM budget (accounting uses lane-padded widths, single count) ----
    cdt_size = jnp.dtype(w1p.dtype).itemsize
    d_in_l = _round_up(d_in, LANE)
    d_out_l = _round_up(d_out, LANE)
    x_size = jnp.dtype(x.dtype).itemsize
    param_bytes = (d_in_l * w_p + w_p * w_p + w_p * d_out_l) * cdt_size \
        + (2 * w_p + d_out_l) * 4
    x_bytes = 2 * tb * d_in_l * x_size          # double-buffered input tiles
    out_bytes = 2 * tb * d_out_l * x_size       # double-buffered output tiles
    act_bytes = tb * (2 * w_p + d_out_l) * 4    # h1 / h2 / out f32 intermediates
    vmem_need = param_bytes + x_bytes + out_bytes + act_bytes

    try:
        phys_vmem = int(pltpu.get_tpu_info().vmem_capacity_bytes)
    except Exception:
        phys_vmem = 64 << 20                    # conservative (v7x per-TC)
    if param_bytes + x_bytes + out_bytes + act_bytes > int(0.75 * phys_vmem):
        # TODO(synk): K-tiled fallback (width grid axis marked "arbitrary" +
        # f32 VMEM accumulator) for widths whose resident weights exceed VMEM
        # (notably v7x's 64 MiB vs v5e/v6e's 128 MiB).
        raise ValueError("hidden width too large for VMEM-resident weights; "
                         "K-tiled fallback not implemented")
    vmem_limit = int(min(max(vmem_need + (8 << 20), 32 << 20),
                         int(0.9 * phys_vmem)))

    # Grid-invariant weights/biases: whole-array VMEM residence, single buffer
    # (no per-grid-step DMA / double buffering).
    resident = pl.BlockSpec(memory_space=pltpu.MemorySpace.VMEM)

    out_p = pl.pallas_call(
        mlp_kernel,
        out_shape=jax.ShapeDtypeStruct((B_p, d_out), x.dtype),
        grid_spec=pltpu.PrefetchScalarGridSpec(
            num_scalar_prefetch=0,
            grid=(nb,),
            in_specs=[pl.BlockSpec((tb, d_in), lambda i: (i, 0)),  # x, unpadded K
                      resident, resident,   # W1, b1
                      resident, resident,   # W2, b2
                      resident, resident],  # W3, b3
            out_specs=pl.BlockSpec((tb, d_out), lambda i: (i, 0)),  # unpadded N
        ),
        compiler_params=pltpu.CompilerParams(
            dimension_semantics=("parallel",),
            vmem_limit_bytes=vmem_limit),
    )(xp, w1p, b1p, w2p, b2p, w3p, b3p)

    return out_p if B_p == B else out_p[:B]


def init_params(key, input_shape, output_shape, w):
    """Deterministic init. Shapes mirror nn.Linear (stored pre-transposed)."""
    k1, k2, k3, k4, k5, k6 = jax.random.split(key, 6)

    def lin(kw, kb, fan_in, fan_out):
        bound = 1.0 / jnp.sqrt(fan_in)
        W = jax.random.uniform(kw, (fan_in, fan_out), jnp.float32, -bound, bound)
        b = jax.random.uniform(kb, (1, fan_out), jnp.float32, -bound, bound)
        return W, b

    w1, b1 = lin(k1, k2, input_shape, w)
    w2, b2 = lin(k3, k4, w, w)
    w3, b3 = lin(k5, k6, w, output_shape)
    return (w1, b1, w2, b2, w3, b3)


def reference_forward(x, params):
    w1, b1, w2, b2, w3, b3 = params
    h1 = jnp.maximum(x @ w1 + b1, 0.0)
    h2 = jnp.maximum(h1 @ w2 + b2, 0.0)
    return h2 @ w3 + b3


if __name__ == "__main__":
    input_shape, output_shape, width = 32, 16, 64
    batch = 16

    key = jax.random.PRNGKey(0)
    kx, kp = jax.random.split(key)
    x = jax.random.normal(kx, (batch, input_shape), jnp.float32)
    params = init_params(kp, input_shape, output_shape, width)
    ref = reference_forward(x, params)

    # f32 path: exact match against the reference.
    prep_f32 = prepare_params(params, compute_dtype=jnp.float32)
    out_f32 = jax.block_until_ready(neural_network_forward(x, prep_f32))
    assert out_f32.shape == (batch, output_shape)
    assert jnp.allclose(out_f32, ref, atol=1e-5, rtol=1e-5)

    # bf16-MXU path (recommended on v5e/v6e/v7x): f32 accumulation, looser tol.
    prep_bf16 = prepare_params(params, compute_dtype=jnp.bfloat16)
    out_bf16 = jax.block_until_ready(neural_network_forward(x, prep_bf16))
    assert out_bf16.shape == (batch, output_shape)
    assert jnp.allclose(out_bf16, ref, atol=5e-2, rtol=5e-2)

    print("KERNEL_OK")
</pallas_src>

<mosaic_0001>
module attributes {stable_mosaic.version = 11 : i64} {
  func.func @mlp_kernel(%arg0: i32, %arg1: memref<16x32xf32, #tpu.memory_space<vmem>>, %arg2: memref<32x128xf32, #tpu.memory_space<vmem>>, %arg3: memref<1x128xf32, #tpu.memory_space<vmem>>, %arg4: memref<128x128xf32, #tpu.memory_space<vmem>>, %arg5: memref<1x128xf32, #tpu.memory_space<vmem>>, %arg6: memref<128x16xf32, #tpu.memory_space<vmem>>, %arg7: memref<1x16xf32, #tpu.memory_space<vmem>>, %arg8: memref<16x16xf32, #tpu.memory_space<vmem>>) attributes {dimension_semantics = [#tpu.dimension_semantics<parallel>], iteration_bounds = array<i64: 1>, scalar_prefetch = 0 : i64, scratch_operands = 0 : i64, tpu.core_type = #tpu.core_type<tc>, window_params = [{transform_indices = @transform_0, window_bounds = array<i64: 16, 32>}, {pipeline_mode = #tpu.pipeline_mode<synchronous>, transform_indices = @transform_1, window_bounds = array<i64: 32, 128>}, {pipeline_mode = #tpu.pipeline_mode<synchronous>, transform_indices = @transform_2, window_bounds = array<i64: 1, 128>}, {pipeline_mode = #tpu.pipeline_mode<synchronous>, transform_indices = @transform_3, window_bounds = array<i64: 128, 128>}, {pipeline_mode = #tpu.pipeline_mode<synchronous>, transform_indices = @transform_4, window_bounds = array<i64: 1, 128>}, {pipeline_mode = #tpu.pipeline_mode<synchronous>, transform_indices = @transform_5, window_bounds = array<i64: 128, 16>}, {pipeline_mode = #tpu.pipeline_mode<synchronous>, transform_indices = @transform_6, window_bounds = array<i64: 1, 16>}, {transform_indices = @transform_7, window_bounds = array<i64: 16, 16>}]} {
    %c0 = arith.constant 0 : index
    %c0_0 = arith.constant 0 : index
    %0 = vector.load %arg1[%c0, %c0_0] : memref<16x32xf32, #tpu.memory_space<vmem>>, vector<16x32xf32>
    %c0_1 = arith.constant 0 : index
    %c0_2 = arith.constant 0 : index
    %1 = vector.load %arg2[%c0_1, %c0_2] : memref<32x128xf32, #tpu.memory_space<vmem>>, vector<32x128xf32>
    %cst = arith.constant dense<0.000000e+00> : vector<16x128xf32>
    %2 = tpu.matmul %0, %1, %cst {dimension_numbers = #tpu.dot_dimension_numbers<[1], [0], [0], [1], [0, 0, 1, 1], [], []>} : vector<16x32xf32>, vector<32x128xf32>, vector<16x128xf32> -> vector<16x128xf32>
    %c0_3 = arith.constant 0 : index
    %c0_4 = arith.constant 0 : index
    %3 = vector.load %arg3[%c0_3, %c0_4] : memref<1x128xf32, #tpu.memory_space<vmem>>, vector<1x128xf32>
    %4 = vector.broadcast %3 : vector<1x128xf32> to vector<16x128xf32>
    %5 = arith.addf %2, %4 : vector<16x128xf32>
    %cst_5 = arith.constant 0.000000e+00 : f32
    %6 = vector.broadcast %cst_5 : f32 to vector<16x128xf32>
    %7 = arith.maximumf %5, %6 : vector<16x128xf32>
    %c0_6 = arith.constant 0 : index
    %c0_7 = arith.constant 0 : index
    %8 = vector.load %arg4[%c0_6, %c0_7] : memref<128x128xf32, #tpu.memory_space<vmem>>, vector<128x128xf32>
    %cst_8 = arith.constant dense<0.000000e+00> : vector<16x128xf32>
    %9 = tpu.matmul %7, %8, %cst_8 {dimension_numbers = #tpu.dot_dimension_numbers<[1], [0], [0], [1], [0, 0, 1, 1], [], []>} : vector<16x128xf32>, vector<128x128xf32>, vector<16x128xf32> -> vector<16x128xf32>
    %c0_9 = arith.constant 0 : index
    %c0_10 = arith.constant 0 : index
    %10 = vector.load %arg5[%c0_9, %c0_10] : memref<1x128xf32, #tpu.memory_space<vmem>>, vector<1x128xf32>
    %11 = vector.broadcast %10 : vector<1x128xf32> to vector<16x128xf32>
    %12 = arith.addf %9, %11 : vector<16x128xf32>
    %cst_11 = arith.constant 0.000000e+00 : f32
    %13 = vector.broadcast %cst_11 : f32 to vector<16x128xf32>
    %14 = arith.maximumf %12, %13 : vector<16x128xf32>
    %c0_12 = arith.constant 0 : index
    %c0_13 = arith.constant 0 : index
    %15 = vector.load %arg6[%c0_12, %c0_13] : memref<128x16xf32, #tpu.memory_space<vmem>>, vector<128x16xf32>
    %cst_14 = arith.constant dense<0.000000e+00> : vector<16x16xf32>
    %16 = tpu.matmul %14, %15, %cst_14 {dimension_numbers = #tpu.dot_dimension_numbers<[1], [0], [0], [1], [0, 0, 1, 1], [], []>} : vector<16x128xf32>, vector<128x16xf32>, vector<16x16xf32> -> vector<16x16xf32>
    %c0_15 = arith.constant 0 : index
    %c0_16 = arith.constant 0 : index
    %17 = vector.load %arg7[%c0_15, %c0_16] : memref<1x16xf32, #tpu.memory_space<vmem>>, vector<1x16xf32>
    %18 = vector.broadcast %17 : vector<1x16xf32> to vector<16x16xf32>
    %19 = arith.addf %16, %18 : vector<16x16xf32>
    %c0_17 = arith.constant 0 : index
    %c0_18 = arith.constant 0 : index
    %20 = vector.load %arg8[%c0_17, %c0_18] : memref<16x16xf32, #tpu.memory_space<vmem>>, vector<16x16xf32>
    tpu.vector_store %arg8[%c0_17, %c0_18], %19 {strides = array<i32>} : memref<16x16xf32, #tpu.memory_space<vmem>>, vector<16x16xf32>,
    return
  }
  func.func @transform_0(%arg0: i32) -> (i32, i32) {
    %c0_i32 = arith.constant 0 : i32
    %c0_i32_0 = arith.constant 0 : i32
    return %arg0, %c0_i32 : i32, i32
  }
  func.func @transform_1(%arg0: i32) -> (i32, i32) {
    %c0_i32 = arith.constant 0 : i32
    %c0_i32_0 = arith.constant 0 : i32
    %c0_i32_1 = arith.constant 0 : i32
    return %c0_i32, %c0_i32_0 : i32, i32
  }
  func.func @transform_2(%arg0: i32) -> (i32, i32) {
    %c0_i32 = arith.constant 0 : i32
    %c0_i32_0 = arith.constant 0 : i32
    %c0_i32_1 = arith.constant 0 : i32
    return %c0_i32, %c0_i32_0 : i32, i32
  }
  func.func @transform_3(%arg0: i32) -> (i32, i32) {
    %c0_i32 = arith.constant 0 : i32
    %c0_i32_0 = arith.constant 0 : i32
    %c0_i32_1 = arith.constant 0 : i32
    return %c0_i32, %c0_i32_0 : i32, i32
  }
  func.func @transform_4(%arg0: i32) -> (i32, i32) {
    %c0_i32 = arith.constant 0 : i32
    %c0_i32_0 = arith.constant 0 : i32
    %c0_i32_1 = arith.constant 0 : i32
    return %c0_i32, %c0_i32_0 : i32, i32
  }
  func.func @transform_5(%arg0: i32) -> (i32, i32) {
    %c0_i32 = arith.constant 0 : i32
    %c0_i32_0 = arith.constant 0 : i32
    %c0_i32_1 = arith.constant 0 : i32
    return %c0_i32, %c0_i32_0 : i32, i32
  }
  func.func @transform_6(%arg0: i32) -> (i32, i32) {
    %c0_i32 = arith.constant 0 : i32
    %c0_i32_0 = arith.constant 0 : i32
    %c0_i32_1 = arith.constant 0 : i32
    return %c0_i32, %c0_i32_0 : i32, i32
  }
  func.func @transform_7(%arg0: i32) -> (i32, i32) {
    %c0_i32 = arith.constant 0 : i32
    %c0_i32_0 = arith.constant 0 : i32
    return %arg0, %c0_i32 : i32, i32
  }
}

</mosaic_0001>

<bundles_post_ra>
// kernel: tpu_custom_call.1
= control target key start
LH: loop header
LB: loop body
LE: loop exit
PB: predicated region body
PF: predicated region fallthrough
CT: control target
= control target key end

     0   :  { %12 = vsyncpa [#allocation3], 0  ;;  %s795_s0 = inlined_call_operand.vmem [shape: f32[16,32], index: 0, kind: input, shape index: {}]   ;;  %s796_s1 = inlined_call_operand.hbm [shape: f32[32,128], index: 1, kind: input, shape index: {}]   ;;  %s797_s2 = inlined_call_operand.vmem [shape: f32[1,128], index: 2, kind: input, shape index: {}]   ;;  %s798_s3 = inlined_call_operand.vmem [shape: f32[128,128], index: 3, kind: input, shape index: {}]   ;;  %s799_s4 = inlined_call_operand.vmem [shape: f32[1,128], index: 4, kind: input, shape index: {}]   ;;  %s800_s5 = inlined_call_operand.vmem [shape: f32[128,16], index: 5, kind: input, shape index: {}]   ;;  %s801_s6 = inlined_call_operand.vmem [shape: f32[1,16], index: 6, kind: input, shape index: {}]   ;;  %s802_s7 = inlined_call_operand.hbm [shape: f32[16,16], index: 7, kind: output, shape index: {}]  }
   0x1   :  { %13 = vsyncpa [#allocation4], 0  ;;  %s608_s24 = smov [#allocation2]   ;;  %s560_s28 = scalar_lea.hbm %s796_s1, 512 }
   0x2   :  { %s21_s25 = sshll.u32 %s608_s24, 4  ;;  %p561_p0 = scmp.ne.s32.totalorder %s796_s1, %s560_s28  ;;  %s22_s25 = int_to_ptr.vmem [resolvable:$true] %s21_s25 }
   0x3   :  { %p564_p1 = scmp.lt.u32.totalorder %s560_s28, %s796_s1 }
   0x5   :  { %p566_p2 = pnand %p564_p1, %p561_p0 }
   0x7   :  { %569 = shalt.err (!%p566_p2)
}
   0x8   :  { %s570_s10 = scalar_lea.vmem %s22_s25, 512  ;;  %p575_p4 = scmp.lt.s32.totalorder %s22_s25, %s22_s25 }
   0x9   :  { %p571_p3 = scmp.ne.s32.totalorder %s22_s25, %s570_s10  ;;  %p576_p5 = scmp.lt.s32.totalorder %s570_s10, %s570_s10 }
   0xb   :  { %p577_p6 = por %p576_p5, %p575_p4 }
   0xd   :  { %p578_p7 = pnand %p577_p6, %p571_p3 }
   0xf   :  { %581 = shalt.err (!%p578_p7)
}
  0x10   :  { %s609_s11 = smov 128   ;;  %s610_s12 = smov 8  }
  0x11   :  { %27 = dma.hbm_to_vmem [thread:$0]  %s796_s1, 512, %s22_s25, [#allocation3], %s609_s11, %s609_s11, %s610_s12  }
  0x12   :  { %604 = dma.done.wait [#allocation3], 512  }
  0x13   :  { %605 = vsyncadd [#allocation3], 4294966784  ;;  %vm54_vm0 = vcmask 261120   ;;  %v43_v0 = vld [vmem:[#allocation2] sm:$0xff]  ;;  %v44_v1 = vld [vmem:[#allocation2 + $0x8] sm:$0xff]  ;;  %vm336_vm1 = vcmask 130048  }
  0x14   :  { %v45_v2 = vld [vmem:[#allocation2 + $0x10] sm:$0xff]  ;;  %v484_v3 = vpack.c.bf16 %v44_v1, %v43_v0  ;;  %v46_v4 = vld [vmem:[#allocation2 + $0x18] sm:$0xff]  ;;  %v41_v5 = vld [vmem:[%s795_s0] sm:$0xff] }
  0x15   :  { %v488_v6 = vpack.c.bf16 %v46_v4, %v45_v2  ;;  %411 = vmatprep.mubr.msk.f32.mxu0 %vm54_vm0, %v41_v5  ;;  %v138_v7 = vld [vmem:[%s798_s3] sm:$0xff]  ;;  %v139_v8 = vld [vmem:[%s798_s3 + $0x8] sm:$0xff]  ;;  %v140_v9 = vld [vmem:[%s798_s3 + $0x10] sm:$0xff] }
  0x16   :  { %485 = vmatprep.subr.bf16.mxu0 %v484_v3  ;;  %v492_v10 = vpack.c.bf16 %v139_v8, %v138_v7  ;;  %v141_v11 = vld [vmem:[%s798_s3 + $0x18] sm:$0xff]  ;;  %v142_v13 = vld [vmem:[%s798_s3 + $0x20] sm:$0xff]  ;;  %v143_v14 = vld [vmem:[%s798_s3 + $0x28] sm:$0xff] }
  0x17   :  { %487 = vmatpush3.bf16.msra.mxu0 %v484_v3  ;;  %v496_v12 = vpack.c.bf16 %v141_v11, %v140_v9  ;;  %v500_v15 = vpack.c.bf16 %v143_v14, %v142_v13  ;;  %v42_v16 = vld [vmem:[%s795_s0 + $0x8] sm:$0xff]  ;;  %v144_v17 = vld [vmem:[%s798_s3 + $0x30] sm:$0xff]  ;;  %v145_v18 = vld [vmem:[%s798_s3 + $0x38] sm:$0xff] }
  0x18   :  { %489 = vmatprep.subr.bf16.mxu0 %v488_v6  ;;  %493 = vmatprep.subr.bf16.mxu1 %v492_v10  ;;  %v504_v19 = vpack.c.bf16 %v145_v18, %v144_v17  ;;  %v146_v20 = vld [vmem:[%s798_s3 + $0x40] sm:$0xff]  ;;  %v147_v21 = vld [vmem:[%s798_s3 + $0x48] sm:$0xff]  ;;  %v148_v23 = vld [vmem:[%s798_s3 + $0x50] sm:$0xff] }
  0x19   :  { %495 = vmatpush3.bf16.msra.mxu1 %v492_v10  ;;  %v508_v22 = vpack.c.bf16 %v147_v21, %v146_v20  ;;  %v149_v24 = vld [vmem:[%s798_s3 + $0x58] sm:$0xff]  ;;  %v150_v26 = vld [vmem:[%s798_s3 + $0x60] sm:$0xff]  ;;  %v151_v27 = vld [vmem:[%s798_s3 + $0x68] sm:$0xff] }
  0x1a   :  { %497 = vmatprep.subr.bf16.mxu1 %v496_v12  ;;  %v512_v25 = vpack.c.bf16 %v149_v24, %v148_v23  ;;  %v516_v28 = vpack.c.bf16 %v151_v27, %v150_v26  ;;  %v152_v29 = vld [vmem:[%s798_s3 + $0x70] sm:$0xff]  ;;  %v153_v30 = vld [vmem:[%s798_s3 + $0x78] sm:$0xff]  ;;  %v238_v32 = vld [vmem:[%s800_s5] sm:$0xff] }
  0x1b   :  { %491 = vmatpush3.bf16.msra.mxu0 %v488_v6  ;;  %v520_v31 = vpack.c.bf16 %v153_v30, %v152_v29  ;;  %v239_v33 = vld [vmem:[%s800_s5 + $0x8] sm:$0xff]  ;;  %v240_v34 = vld [vmem:[%s800_s5 + $0x10] sm:$0xff]  ;;  %v241_v36 = vld [vmem:[%s800_s5 + $0x18] sm:$0xff] }
  0x1c   :  { %v524_v35 = vpack.c.bf16 %v239_v33, %v238_v32  ;;  %v528_v37 = vpack.c.bf16 %v241_v36, %v240_v34  ;;  %v242_v38 = vld [vmem:[%s800_s5 + $0x20] sm:$0xff]  ;;  %v243_v39 = vld [vmem:[%s800_s5 + $0x28] sm:$0xff]  ;;  %v244_v41 = vld [vmem:[%s800_s5 + $0x30] sm:$0xff] }
  0x1d   :  { %499 = vmatpush3.bf16.msra.mxu1 %v496_v12  ;;  %v532_v40 = vpack.c.bf16 %v243_v39, %v242_v38  ;;  %v245_v42 = vld [vmem:[%s800_s5 + $0x38] sm:$0xff]  ;;  %v246_v44 = vld [vmem:[%s800_s5 + $0x40] sm:$0xff]  ;;  %v247_v45 = vld [vmem:[%s800_s5 + $0x48] sm:$0xff] }
  0x1e   :  { %412 = vmatmul.mubr.msk.f32.vlgmr.msra.gmra.mrb[0].mxu0 %vm54_vm0, %v42_v16  ;;  %501 = vmatprep.subr.bf16.mxu1 %v500_v15  ;;  %v536_v43 = vpack.c.bf16 %v245_v42, %v244_v41  ;;  %v540_v46 = vpack.c.bf16 %v247_v45, %v246_v44  ;;  %v248_v47 = vld [vmem:[%s800_s5 + $0x50] sm:$0xff]  ;;  %v249_v48 = vld [vmem:[%s800_s5 + $0x58] sm:$0xff]  ;;  %v250_v50 = vld [vmem:[%s800_s5 + $0x60] sm:$0xff] }
  0x1f   :  { %525 = vmatprep.subr.bf16.mxu0 %v524_v35  ;;  %v544_v49 = vpack.c.bf16 %v249_v48, %v248_v47  ;;  %v251_v51 = vld [vmem:[%s800_s5 + $0x68] sm:$0xff]  ;;  %v356_v53 = vld [vmem:[%s797_s2] ss:$0 sm:$0xff]  ;;  %v252_v60 = vld [vmem:[%s800_s5 + $0x70] sm:$0xff] }
  0x20   :  { %527 = vmatpush3.bf16.msra.mxu0 %v524_v35  ;;  %v548_v52 = vpack.c.bf16 %v251_v51, %v250_v50  ;;  %v253_v61 = vld [vmem:[%s800_s5 + $0x78] sm:$0xff]  ;;  %v359_v63 = vld [vmem:[%s799_s4] ss:$0 sm:$0xff]  ;;  %s611_s5 = smov [#allocation5]  }
  0x21   :  { %503 = vmatpush3.bf16.msra.mxu1 %v500_v15  ;;  %529 = vmatprep.subr.bf16.mxu0 %v528_v37  ;;  %v552_v62 = vpack.c.bf16 %v253_v61, %v252_v60  ;;  %v360_v6 = vld [vmem:[%s801_s6] ss:$0 sm:$0xff]  ;;  %s344_s17 = sshll.u32 %s611_s5, 4  ;;  %s345_s17 = int_to_ptr.vmem [resolvable:$true] %s344_s17 }
  0x22   :  { %505 = vmatprep.subr.bf16.mxu1 %v504_v19  ;;  %s582_s4 = scalar_lea.vmem %s345_s17, 256  ;;  %p587_p9 = scmp.lt.s32.totalorder %s345_s17, %s345_s17 }
  0x23   :  { %p583_p8 = scmp.ne.s32.totalorder %s345_s17, %s582_s4  ;;  %p588_p10 = scmp.lt.s32.totalorder %s582_s4, %s582_s4 }
  0x24   :  { %531 = vmatpush3.bf16.msra.mxu0 %v528_v37 }
  0x25   :  { %507 = vmatpush3.bf16.msra.mxu1 %v504_v19  ;;  %533 = vmatprep.subr.bf16.mxu0 %v532_v40  ;;  %p589_p11 = por %p588_p10, %p587_p9 }
  0x26   :  { %509 = vmatprep.subr.bf16.mxu1 %v508_v22 }
  0x27   :  { %p590_p12 = pnand %p589_p11, %p583_p8 }
  0x28   :  { %535 = vmatpush3.bf16.msra.mxu0 %v532_v40 }
  0x29   :  { %511 = vmatpush3.bf16.msra.mxu1 %v508_v22  ;;  %537 = vmatprep.subr.bf16.mxu0 %v536_v43 }
  0x2a   :  { %513 = vmatprep.subr.bf16.mxu1 %v512_v25 }
  0x2c   :  { %539 = vmatpush3.bf16.msra.mxu0 %v536_v43 }
  0x2d   :  { %515 = vmatpush3.bf16.msra.mxu1 %v512_v25  ;;  %541 = vmatprep.subr.bf16.mxu0 %v540_v46 }
  0x2e   :  { %517 = vmatprep.subr.bf16.mxu1 %v516_v28 }
  0x30   :  { %543 = vmatpush3.bf16.msra.mxu0 %v540_v46 }
  0x31   :  { %519 = vmatpush3.bf16.msra.mxu1 %v516_v28  ;;  %545 = vmatprep.subr.bf16.mxu0 %v544_v49 }
  0x32   :  { %521 = vmatprep.subr.bf16.mxu1 %v520_v31 }
  0x34   :  { %547 = vmatpush3.bf16.msra.mxu0 %v544_v49 }
  0x35   :  { %523 = vmatpush3.bf16.msra.mxu1 %v520_v31  ;;  %549 = vmatprep.subr.bf16.mxu0 %v548_v52 }
  0x38   :  { %551 = vmatpush3.bf16.msra.mxu0 %v548_v52 }
  0x39   :  { %553 = vmatprep.subr.bf16.mxu0 %v552_v62 }
  0x3c   :  { %555 = vmatpush3.bf16.msra.mxu0 %v552_v62 }
  0xf1   :  { %v413_v54 = vpop.f32.mrb[0].mxu0 }
  0xf2   :  { %v133_v55 = vadd.f32 %v413_v54, %v356_v53  ;;  %v127_v56 = vpop.f32.mrb[1].mxu0 }
  0xf3   :  { %v128_v57 = vadd.f32 %v356_v53, %v127_v56 }
  0xf4   :  { %v137_v59 = vmax.f32 %v133_v55, 0.0 }
  0xf5   :  { %v136_v58 = vmax.f32 %v128_v57, 0.0 }
  0xf7   :  { %446 = vmatprep.mubr.f32.mxu1 %v136_v58 }
  0xf8   :  { %447 = vmatmul.mubr.f32.vlgmr.msra.gmra.mrb[0].mxu1 %v137_v59 }
 0x1cb   :  { %v448_v0 = vpop.f32.mrb[0].mxu1 }
 0x1cc   :  { %v233_v1 = vadd.f32 %v448_v0, %v359_v63  ;;  %v227_v2 = vpop.f32.mrb[1].mxu1 }
 0x1cd   :  { %v228_v3 = vadd.f32 %v359_v63, %v227_v2 }
 0x1ce   :  { %v237_v5 = vmax.f32 %v233_v1, 0.0 }
 0x1cf   :  { %v236_v4 = vmax.f32 %v228_v3, 0.0 }
 0x1d1   :  { %481 = vmatprep.mubr.f32.mxu0 %v236_v4 }
 0x1d2   :  { %482 = vmatmul.mubr.f32.vlgmr.msra.gmra.mrb[2].mxu0 %v237_v5 }
 0x2a5   :  { %v483_v7 = vpop.f32.mrb[2].mxu0 }
 0x2a6   :  { %v333_v8 = vadd.f32 %v483_v7, %v360_v6  ;;  %v327_v9 = vpop.f32.mrb[3].mxu0 }
 0x2a7   :  { %v328_v10 = vadd.f32 %v360_v6, %v327_v9 }
 0x2a8   :  { %338 = vst.msk [vmem:[#allocation5 + $0x8] sm:$0xff] %vm336_vm1, %v333_v8 }
 0x2a9   :  { %337 = vst.msk [vmem:[#allocation5] sm:$0xff] %vm336_vm1, %v328_v10 }
 0x2aa   :  { %593 = shalt.err (!%p590_p12)
}
 0x2ab   :  { %s594_s6 = scalar_lea.hbm %s802_s7, 256 }
 0x2ac   :  { %p595_p13 = scmp.ne.s32.totalorder %s802_s7, %s594_s6  ;;  %p598_p0 = scmp.lt.u32.totalorder %s594_s6, %s802_s7 }
 0x2ae   :  { %p600_p1 = pnand %p598_p0, %p595_p13 }
 0x2b0   :  { %603 = shalt.err (!%p600_p1)
}
 0x2b1   :  { %350 = dma.vmem_to_hbm [thread:$0]  %s345_s17, 256, %s802_s7, [#allocation4], %s609_s11, %s609_s11, %s610_s12  }
 0x2b2   :  { %606 = dma.done.wait [#allocation4], 256  }
 0x2b3   :  { %607 = vsyncadd [#allocation4], 4294967040 }
 0x2b4   :  { %354 = vsyncpa [#allocation3], 1 }
 0x2b5   :  { %355 = vsyncpa [#allocation4], 1 }

</bundles_post_ra>
